<compile_context>
chip_gen: v7x
topology: tpu7x:2x2x1
jax: 0.10.0
libtpu: 0.0.40
codegen_flags: <defaults>
</compile_context>

<pallas_src>
import jax
import jax.numpy as jnp
from jax.experimental import pallas as pl
from jax.experimental.pallas import tpu as pltpu


# ----------------------------- helpers ---------------------------------------

def _round8(n):
    return (n + 7) // 8 * 8


# ----------------------------- kernel ----------------------------------------

def make_soft_q_kernel(off):
    """Builds the kernel with static slab offsets baked in."""
    S, A, B, H = off["S"], off["A"], off["B"], off["H"]
    w1s0, w1a0 = off["w1s"], off["w1a"]
    b10, w20, b20 = off["b1"], off["w2"], off["b2"]
    w30, b30 = off["w3"], off["b3"]

    def kernel(s_ref, a_ref, p_ref, q_ref):
        # linear1 on the (implicitly) concatenated [state, action] input:
        #   cat(s, a) @ W1 == s @ W1s + a @ W1a   (no in-kernel concat)
        h = (jnp.dot(s_ref[...], p_ref[w1s0:w1s0 + S, :],
                     preferred_element_type=jnp.float32)
             + jnp.dot(a_ref[...], p_ref[w1a0:w1a0 + A, :],
                       preferred_element_type=jnp.float32)
             + p_ref[b10:b10 + B, :])              # bias pre-broadcast to (B,H)
        h = jnp.maximum(h, 0.0)                    # ReLU

        # linear2
        h = (jnp.dot(h, p_ref[w20:w20 + H, :],
                     preferred_element_type=jnp.float32)
             + p_ref[b20:b20 + B, :])
        h = jnp.maximum(h, 0.0)                    # ReLU

        # linear3 (out dim 1): multiply + lane reduce instead of an (H,1) matmul
        w3t = p_ref[w30:w30 + 1, :]                # (1, H)  — w3 stored transposed
        b3 = p_ref[b30:b30 + 1, 0:1]               # (1, 1)
        q_ref[...] = jnp.sum(h * w3t, axis=-1, keepdims=True) + b3

    return kernel


# ----------------------------- parameter packing ------------------------------

def pack_params(raw, state_dim, action_dim, hidden_size, batch):
    """Packs all parameters into one (rows, H) f32 slab.

    Every block starts on an 8-row (sublane-aligned) boundary; b1/b2 are
    pre-broadcast to (batch, H); w3 is stored transposed as a (1, H) row and
    b3 sits at element [b3_row, 0].
    """
    S, A, H, B = state_dim, action_dim, hidden_size, batch
    off = {}
    r = 0

    def take(name, n):
        nonlocal r
        off[name] = r
        r += _round8(n)

    take("w1s", S)
    take("w1a", A)
    take("b1", B)
    take("w2", H)
    take("b2", B)
    take("w3", 1)
    take("b3", 1)
    off.update(S=S, A=A, B=B, H=H)
    rows = r

    w1 = raw["w1"]                                           # (S+A, H)
    slab = jnp.zeros((rows, H), jnp.float32)
    slab = slab.at[off["w1s"]:off["w1s"] + S, :].set(w1[:S, :])
    slab = slab.at[off["w1a"]:off["w1a"] + A, :].set(w1[S:, :])
    slab = slab.at[off["b1"]:off["b1"] + B, :].set(
        jnp.broadcast_to(raw["b1"].reshape(1, H), (B, H)))
    slab = slab.at[off["w2"]:off["w2"] + H, :].set(raw["w2"])
    slab = slab.at[off["b2"]:off["b2"] + B, :].set(
        jnp.broadcast_to(raw["b2"].reshape(1, H), (B, H)))
    slab = slab.at[off["w3"], :].set(raw["w3"].reshape(H))   # transposed (1, H)
    slab = slab.at[off["b3"], 0].set(raw["b3"].reshape(()))
    return slab, off


# ----------------------------- wrapper ----------------------------------------

def soft_q_forward(state, action, slab, off):
    """state: (B, S) f32, action: (B, A) f32 -> q: (B, 1) f32."""
    B, H = state.shape[0], off["H"]
    D = off["S"] + off["A"]
    vmem = pl.BlockSpec(memory_space=pltpu.MemorySpace.VMEM)

    flops = 2 * B * D * H + 2 * B * H * H + 2 * B * H
    bytes_accessed = 4 * (state.size + action.size + slab.size + B)

    return pl.pallas_call(
        make_soft_q_kernel(off),
        out_shape=jax.ShapeDtypeStruct((B, 1), jnp.float32),
        in_specs=[vmem, vmem, vmem],     # state, action, packed params — all VMEM
        out_specs=vmem,
        cost_estimate=pl.CostEstimate(flops=flops, transcendentals=0,
                                      bytes_accessed=bytes_accessed),
    )(state, action, slab)


# ----------------------------- init (matches PyTorch) --------------------------

def init_raw_params(key, state_dim, action_dim, hidden_size, init_w=0.003):
    """Uniform fan-in init for linear1/linear2, uniform(-init_w, init_w) for
    linear3 — matching the PyTorch module.  Weights stored (in, out)."""
    D = state_dim + action_dim
    k1, k2, k3, k4, k5, k6 = jax.random.split(key, 6)

    bound1 = 1.0 / jnp.sqrt(D)
    w1 = jax.random.uniform(k1, (D, hidden_size), jnp.float32, -bound1, bound1)
    b1 = jax.random.uniform(k2, (hidden_size,), jnp.float32, -bound1, bound1)

    bound2 = 1.0 / jnp.sqrt(hidden_size)
    w2 = jax.random.uniform(k3, (hidden_size, hidden_size), jnp.float32,
                            -bound2, bound2)
    b2 = jax.random.uniform(k4, (hidden_size,), jnp.float32, -bound2, bound2)

    w3 = jax.random.uniform(k5, (hidden_size, 1), jnp.float32, -init_w, init_w)
    b3 = jax.random.uniform(k6, (1,), jnp.float32, -init_w, init_w)

    return {"w1": w1, "b1": b1, "w2": w2, "b2": b2, "w3": w3, "b3": b3}


# ----------------------------- reference (pure JAX) -----------------------------

def reference_forward(state, action, raw):
    x = jnp.concatenate([state, action], axis=1)
    h = jnp.maximum(x @ raw["w1"] + raw["b1"], 0.0)
    h = jnp.maximum(h @ raw["w2"] + raw["b2"], 0.0)
    return h @ raw["w3"] + raw["b3"]


# ----------------------------- main --------------------------------------------

if __name__ == "__main__":
    state_dim, action_dim = 8, 8
    hidden_size = 32
    batch = 8

    key = jax.random.PRNGKey(0)
    k_p, k_s, k_a = jax.random.split(key, 3)
    raw = init_raw_params(k_p, state_dim, action_dim, hidden_size)
    slab, off = pack_params(raw, state_dim, action_dim, hidden_size, batch)

    state = jax.random.normal(k_s, (batch, state_dim), jnp.float32)
    action = jax.random.normal(k_a, (batch, action_dim), jnp.float32)

    q = soft_q_forward(state, action, slab, off)
    jax.block_until_ready(q)

    q_ref = reference_forward(state, action, raw)
    assert q.shape == (batch, 1), q.shape
    assert jnp.allclose(q, q_ref, atol=1e-5, rtol=1e-5), (
        float(jnp.max(jnp.abs(q - q_ref))))

    print("KERNEL_OK")
</pallas_src>

<mosaic_0001>
module attributes {stable_mosaic.version = 11 : i64} {
  func.func @kernel(%arg0: memref<8x8xf32, #tpu.memory_space<vmem>>, %arg1: memref<8x8xf32, #tpu.memory_space<vmem>>, %arg2: memref<80x32xf32, #tpu.memory_space<vmem>>, %arg3: memref<8x1xf32, #tpu.memory_space<vmem>>) attributes {dimension_semantics = [], scalar_prefetch = 0 : i64, scratch_operands = 0 : i64, tpu.core_type = #tpu.core_type<tc>} {
    %c0 = arith.constant 0 : index
    %c0_0 = arith.constant 0 : index
    %0 = vector.load %arg0[%c0, %c0_0] : memref<8x8xf32, #tpu.memory_space<vmem>>, vector<8x8xf32>
    %c0_1 = arith.constant 0 : index
    %c0_2 = arith.constant 0 : index
    %1 = vector.load %arg2[%c0_1, %c0_2] : memref<80x32xf32, #tpu.memory_space<vmem>>, vector<8x32xf32>
    %cst = arith.constant dense<0.000000e+00> : vector<8x32xf32>
    %2 = tpu.matmul %0, %1, %cst {dimension_numbers = #tpu.dot_dimension_numbers<[1], [0], [0], [1], [0, 0, 1, 1], [], []>} : vector<8x8xf32>, vector<8x32xf32>, vector<8x32xf32> -> vector<8x32xf32>
    %c0_3 = arith.constant 0 : index
    %c0_4 = arith.constant 0 : index
    %3 = vector.load %arg1[%c0_3, %c0_4] : memref<8x8xf32, #tpu.memory_space<vmem>>, vector<8x8xf32>
    %c8 = arith.constant 8 : index
    %c0_5 = arith.constant 0 : index
    %4 = vector.load %arg2[%c8, %c0_5] : memref<80x32xf32, #tpu.memory_space<vmem>>, vector<8x32xf32>
    %cst_6 = arith.constant dense<0.000000e+00> : vector<8x32xf32>
    %5 = tpu.matmul %3, %4, %cst_6 {dimension_numbers = #tpu.dot_dimension_numbers<[1], [0], [0], [1], [0, 0, 1, 1], [], []>} : vector<8x8xf32>, vector<8x32xf32>, vector<8x32xf32> -> vector<8x32xf32>
    %6 = arith.addf %2, %5 : vector<8x32xf32>
    %c16 = arith.constant 16 : index
    %c0_7 = arith.constant 0 : index
    %7 = vector.load %arg2[%c16, %c0_7] : memref<80x32xf32, #tpu.memory_space<vmem>>, vector<8x32xf32>
    %8 = arith.addf %6, %7 : vector<8x32xf32>
    %cst_8 = arith.constant 0.000000e+00 : f32
    %9 = vector.broadcast %cst_8 : f32 to vector<8x32xf32>
    %10 = arith.maximumf %8, %9 : vector<8x32xf32>
    %c24 = arith.constant 24 : index
    %c0_9 = arith.constant 0 : index
    %11 = vector.load %arg2[%c24, %c0_9] : memref<80x32xf32, #tpu.memory_space<vmem>>, vector<32x32xf32>
    %cst_10 = arith.constant dense<0.000000e+00> : vector<8x32xf32>
    %12 = tpu.matmul %10, %11, %cst_10 {dimension_numbers = #tpu.dot_dimension_numbers<[1], [0], [0], [1], [0, 0, 1, 1], [], []>} : vector<8x32xf32>, vector<32x32xf32>, vector<8x32xf32> -> vector<8x32xf32>
    %c56 = arith.constant 56 : index
    %c0_11 = arith.constant 0 : index
    %13 = vector.load %arg2[%c56, %c0_11] : memref<80x32xf32, #tpu.memory_space<vmem>>, vector<8x32xf32>
    %14 = arith.addf %12, %13 : vector<8x32xf32>
    %cst_12 = arith.constant 0.000000e+00 : f32
    %15 = vector.broadcast %cst_12 : f32 to vector<8x32xf32>
    %16 = arith.maximumf %14, %15 : vector<8x32xf32>
    %c64 = arith.constant 64 : index
    %c0_13 = arith.constant 0 : index
    %17 = vector.load %arg2[%c64, %c0_13] : memref<80x32xf32, #tpu.memory_space<vmem>>, vector<1x32xf32>
    %c72 = arith.constant 72 : index
    %c0_14 = arith.constant 0 : index
    %18 = vector.load %arg2[%c72, %c0_14] : memref<80x32xf32, #tpu.memory_space<vmem>>, vector<1x1xf32>
    %19 = vector.broadcast %17 : vector<1x32xf32> to vector<8x32xf32>
    %20 = arith.mulf %16, %19 : vector<8x32xf32>
    %cst_15 = arith.constant dense<0.000000e+00> : vector<8xf32>
    %21 = vector.multi_reduction <add>, %20, %cst_15 [1] : vector<8x32xf32> to vector<8xf32>
    %22 = vector.shape_cast %21 : vector<8xf32> to vector<8x1xf32>
    %23 = vector.broadcast %18 : vector<1x1xf32> to vector<8x1xf32>
    %24 = arith.addf %22, %23 : vector<8x1xf32>
    %c0_16 = arith.constant 0 : index
    %c0_17 = arith.constant 0 : index
    %25 = vector.load %arg3[%c0_16, %c0_17] : memref<8x1xf32, #tpu.memory_space<vmem>>, vector<8x1xf32>
    tpu.vector_store %arg3[%c0_16, %c0_17], %24 {strides = array<i32>} : memref<8x1xf32, #tpu.memory_space<vmem>>, vector<8x1xf32>,
    return
  }
}

</mosaic_0001>

<bundles_post_ra>
// kernel: tpu_custom_call.1
= control target key start
LH: loop header
LB: loop body
LE: loop exit
PB: predicated region body
PF: predicated region fallthrough
CT: control target
= control target key end

     0   :  { %vm18_vm0 = vcmask 64512   ;;  %v313_v0 = vmov 0.0   ;;  %vm314_vm1 = vmmov 0   ;;  %v315_v7 = vmov 0.0|0.0   ;;  %s377_s2 = inlined_call_operand.vmem [shape: f32[80,32], index: 2, kind: input, shape index: {}]   ;;  %s378_s1 = inlined_call_operand.vmem [shape: f32[8,8], index: 1, kind: input, shape index: {}]   ;;  %s379_s0 = inlined_call_operand.vmem [shape: f32[8,8], index: 0, kind: input, shape index: {}]   ;;  %s380_s3 = inlined_call_operand.vmem [shape: f32[8,1], index: 3, kind: output, shape index: {}]  }
   0x1   :  { %283 = vmatprep.subr.mxu1 %v313_v0  ;;  %v17_v1 = vld [vmem:[%s377_s2 + $0x8] sm:$0xff]  ;;  %285 = vmatprep.mubr.msk.f32.mxu1 %vm314_vm1, %v313_v0  ;;  %v16_v2 = vld [vmem:[%s378_s1] sm:$0xff]  ;;  %v168_v5 = vld [vmem:[%s377_s2 + $0x18] sm:$0xff]  ;;  %vm173_vm2 = vcmask 261120   ;;  %vm263_vm3 = vcmask 7168  }
   0x2   :  { %v15_v3 = vld [vmem:[%s377_s2] sm:$0xff]  ;;  %284 = vmatpush3.msra.mxu1 %v17_v1  ;;  %301 = vmatprep.mubr.msk.f32.mxu0 %vm314_vm1, %v313_v0  ;;  %v170_v9 = vld [vmem:[%s377_s2 + $0x28] sm:$0xff]  ;;  %v171_v10 = vld [vmem:[%s377_s2 + $0x30] sm:$0xff] }
   0x3   :  { %286 = vmatmul.mubr.msk.f32.vlgmr.msra.gmra.mrb[0].mxu1 %vm18_vm0, %v16_v2  ;;  %288 = vmatprep.subr.mxu1 %v313_v0  ;;  %v14_v4 = vld [vmem:[%s379_s0] sm:$0xff]  ;;  %v308_v11 = vpack.c.bf16 %v171_v10, %v170_v9  ;;  %v165_v15 = vld [vmem:[%s377_s2 + $0x10] sm:$0xff]  ;;  %v172_v20 = vld [vmem:[%s377_s2 + $0x38] sm:$0xff] }
   0x4   :  { %289 = vmatpush3.msra.mxu1 %v15_v3  ;;  %290 = vmatprep.mubr.msk.f32.mxu1 %vm314_vm1, %v313_v0  ;;  %v169_v6 = vld [vmem:[%s377_s2 + $0x20] sm:$0xff]  ;;  %v273_v28 = vld [vmem:[%s377_s2 + $0x48] ss:$0 sm:$0xff] }
   0x5   :  { %304 = vmatprep.subr.bf16.mxu0 %v315_v7  ;;  %v305_v8 = vpack.c.bf16 %v169_v6, %v168_v5  ;;  %v272_v24 = vld [vmem:[%s377_s2 + $0x40] ss:$0 sm:$0xff] }
   0x7   :  { %291 = vmatmul.mubr.msk.f32.vlgmr.msra.gmra.mrb[2].mxu1 %vm18_vm0, %v14_v4  ;;  %306 = vmatpush3.bf16.msra.mxu0 %v305_v8 }
   0x8   :  { %307 = vmatprep.subr.bf16.mxu0 %v315_v7 }
   0xb   :  { %309 = vmatpush3.bf16.msra.mxu0 %v308_v11 }
  0xd6   :  { %v88_v12 = vpop.f32.mrb[0].mxu1 }
  0xd7   :  { %v287_v13 = vpop.f32.mrb[1].mxu1 }
  0xda   :  { %v161_v14 = vpop.f32.mrb[2].mxu1 }
  0xdb   :  { %v162_v16 = vadd.f32 %v161_v14, %v88_v12  ;;  %v292_v17 = vpop.f32.mrb[3].mxu1 }
  0xdd   :  { %v166_v18 = vadd.f32 %v165_v15, %v162_v16 }
  0xdf   :  { %v167_v19 = vmax.f32 %v166_v18, 0.0 }
  0xe1   :  { %302 = vmatmul.mubr.msk.f32.vlgmr.msra.gmra.mrb[0].mxu0 %vm173_vm2, %v167_v19 }
 0x1b4   :  { %v243_v21 = vpop.f32.mrb[0].mxu0 }
 0x1b5   :  { %v244_v22 = vadd.f32 %v243_v21, %v172_v20  ;;  %v303_v23 = vpop.f32.mrb[1].mxu0 }
 0x1b7   :  { %v247_v25 = vmax.f32 %v244_v22, 0.0 }
 0x1b9   :  { %v254_v26 = vmul.f32 %v272_v24, %v247_v25 }
 0x1bb   :  { %v255_v27 = vsel %vm173_vm2, %v254_v26, 0.0 }
 0x1bc   :  { %256 = vadd.xlane.f32.xlu0 %v255_v27 }
 0x249   :  { %v257_v29 = vpop.xlane.xlu0 %256 }
 0x24a   :  { %v262_v30 = vadd.f32 %v273_v28, %v257_v29 }
 0x24c   :  { %264 = vst.msk [vmem:[%s380_s3] sm:$0xff] %vm263_vm3, %v262_v30 }

</bundles_post_ra>
